<compile_context>
chip_gen: v6e
topology: v6e:2x2x1
jax: 0.10.0
libtpu: 0.0.40
codegen_flags: <defaults>
</compile_context>

<pallas_src>
import numpy as np
import jax
import jax.numpy as jnp
from jax.experimental import pallas as pl
from jax.experimental.pallas import tpu as pltpu

OUT_H = 256
OUT_W = 256

# Cap on flattened (n, c) planes per grid step and VMEM budget for the
# double-buffered input+output blocks (fits under default scoped VMEM on v6e/v7x,
# and under the explicit vmem_limit_bytes we pass for v5e).
_MAX_PLANES_PER_STEP = 32
_VMEM_BLOCK_BUDGET = 24 * 1024 * 1024
_VMEM_LIMIT_BYTES = 40 * 1024 * 1024   # < 64 MiB physical per-TC on v7x


def _nearest_selector(out_size: int, in_size: int) -> np.ndarray:
    """One-hot selection matrix (out_size, in_size), PyTorch 'nearest' indexing."""
    idx = np.floor(np.arange(out_size) * (in_size / out_size)).astype(np.int64)
    idx = np.clip(idx, 0, in_size - 1)
    sel = np.zeros((out_size, in_size), dtype=np.float32)
    sel[np.arange(out_size), idx] = 1.0
    return sel


def _select_sel_dtype(dtype):
    dt = np.dtype(dtype)
    if dt == np.dtype(jnp.bfloat16):
        return jnp.bfloat16
    if jnp.issubdtype(dt, jnp.integer) and dt.itemsize == 1:
        # bf16 is exact for 8-bit integer values and keeps the native-rate MXU path.
        return jnp.bfloat16
    # TODO(synk): integer inputs with |x| > 2^24 would round through this f32 path;
    # such inputs would need a non-MXU gather path.
    return jnp.float32


def _pick_plane_block(num_planes: int, in_plane_bytes: int, out_plane_bytes: int) -> int:
    """Plane-block size from a VMEM byte budget, with >=2 grid steps per TensorCore
    (>=4 total) when the plane count allows."""
    per_plane = 2 * (in_plane_bytes + out_plane_bytes)   # double-buffered in + out
    cb = max(1, _VMEM_BLOCK_BUDGET // per_plane)
    cb = min(cb, _MAX_PLANES_PER_STEP)
    cb = min(cb, max(1, num_planes // 4))
    return int(cb)


def _resize_kernel(x_ref, sh_ref, swt_ref, o_ref):
    # x_ref:   (cb, H, W)          -- cb flattened (n, c) planes
    # sh_ref:  (OUT_H, H)          -- one-hot row selector
    # swt_ref: (W, OUT_W)          -- one-hot column selector (pre-transposed)
    # o_ref:   (cb, OUT_H, OUT_W)
    cb, H, W = x_ref.shape
    sh = sh_ref[...]
    swt = swt_ref[...]
    sel_dtype = swt.dtype
    out_dtype = o_ref.dtype
    acc_dtype = jnp.bfloat16 if out_dtype == jnp.bfloat16 else jnp.float32

    x = x_ref[...].astype(sel_dtype)   # no-op for float inputs of matching dtype

    if H % 8 == 0:
        # Fused W-expansion across all planes: one well-shaped MXU matmul whose
        # output is lane-dense (last dim 256). The (cb, H, W)->(cb*H, W) reshape is a
        # sublane-only regroup.
        xw = jnp.dot(x.reshape(cb * H, W), swt,
                     preferred_element_type=sel_dtype)            # (cb*H, 256)
        for c in range(cb):  # small, fully unrolled (cb <= 32)
            out = jnp.dot(sh, xw[c * H:(c + 1) * H, :],
                          preferred_element_type=acc_dtype)        # (256, 256)
            o_ref[c] = out.astype(out_dtype)
    else:
        # Fallback per-plane path (still W-expansion first -> lane-dense intermediates).
        for c in range(cb):
            tmp = jnp.dot(x[c], swt, preferred_element_type=sel_dtype)   # (H, 256)
            out = jnp.dot(sh, tmp, preferred_element_type=acc_dtype)     # (256, 256)
            o_ref[c] = out.astype(out_dtype)


def resize_nearest_256(x: jax.Array) -> jax.Array:
    """Nearest-neighbor upsample of NCHW input to (N, C, 256, 256)."""
    N, C, H, W = x.shape
    P = N * C
    in_dtype = x.dtype

    sel_dtype = _select_sel_dtype(in_dtype)
    sel_itemsize = np.dtype(sel_dtype).itemsize
    sh = jnp.asarray(_nearest_selector(OUT_H, H), dtype=sel_dtype)       # (256, H)
    swt = jnp.asarray(_nearest_selector(OUT_W, W).T, dtype=sel_dtype)    # (W, 256)

    itemsize = np.dtype(in_dtype).itemsize
    in_plane_bytes = H * W * itemsize
    out_plane_bytes = OUT_H * OUT_W * itemsize

    cb = _pick_plane_block(P, in_plane_bytes, out_plane_bytes)
    steps = pl.cdiv(P, cb)
    p_pad = steps * cb

    x_flat = x.reshape(P, H, W)
    if p_pad != P:
        x_flat = jnp.concatenate(
            [x_flat, jnp.zeros((p_pad - P, H, W), dtype=in_dtype)], axis=0)

    flops = 2 * p_pad * (H * W * OUT_W + OUT_H * H * OUT_W)
    bytes_accessed = (p_pad * (in_plane_bytes + out_plane_bytes)
                      + (sh.size + swt.size) * sel_itemsize)

    out = pl.pallas_call(
        _resize_kernel,
        out_shape=jax.ShapeDtypeStruct((p_pad, OUT_H, OUT_W), in_dtype),
        grid=(steps,),
        in_specs=[
            pl.BlockSpec((cb, H, W), lambda i: (i, 0, 0)),
            pl.BlockSpec((OUT_H, H), lambda i: (0, 0)),   # VMEM-resident constant
            pl.BlockSpec((W, OUT_W), lambda i: (0, 0)),   # VMEM-resident constant
        ],
        out_specs=pl.BlockSpec((cb, OUT_H, OUT_W), lambda i: (i, 0, 0)),
        compiler_params=pltpu.CompilerParams(
            dimension_semantics=("parallel",),
            vmem_limit_bytes=_VMEM_LIMIT_BYTES,
        ),
        cost_estimate=pl.CostEstimate(
            flops=int(flops), transcendentals=0, bytes_accessed=int(bytes_accessed)),
    )(x_flat, sh, swt)

    if p_pad != P:
        out = out[:P]
    return out.reshape(N, C, OUT_H, OUT_W)


if __name__ == "__main__":
    key = jax.random.PRNGKey(0)
    N, C, H, W = 2, 4, 16, 16
    x = jax.random.normal(key, (N, C, H, W), dtype=jnp.float32)

    out = resize_nearest_256(x)
    out = jax.block_until_ready(out)

    # Reference: direct nearest-neighbor gather with the PyTorch index convention.
    x_np = np.asarray(x)
    idx_h = np.clip(np.floor(np.arange(OUT_H) * (H / OUT_H)).astype(np.int64), 0, H - 1)
    idx_w = np.clip(np.floor(np.arange(OUT_W) * (W / OUT_W)).astype(np.int64), 0, W - 1)
    ref = x_np[:, :, idx_h][:, :, :, idx_w]

    assert out.shape == (N, C, OUT_H, OUT_W), out.shape
    np.testing.assert_allclose(np.asarray(out), ref, rtol=0, atol=0)
    print("KERNEL_OK")
</pallas_src>

<mosaic_0001>
module attributes {stable_mosaic.version = 11 : i64} {
  func.func @_resize_kernel(%arg0: i32, %arg1: memref<2x16x16xf32, #tpu.memory_space<vmem>>, %arg2: memref<256x16xf32, #tpu.memory_space<vmem>>, %arg3: memref<16x256xf32, #tpu.memory_space<vmem>>, %arg4: memref<2x256x256xf32, #tpu.memory_space<vmem>>) attributes {dimension_semantics = [#tpu.dimension_semantics<parallel>], iteration_bounds = array<i64: 4>, scalar_prefetch = 0 : i64, scratch_operands = 0 : i64, tpu.core_type = #tpu.core_type<tc>, window_params = [{transform_indices = @transform_0, window_bounds = array<i64: 2, 16, 16>}, {pipeline_mode = #tpu.pipeline_mode<synchronous>, transform_indices = @transform_1, window_bounds = array<i64: 256, 16>}, {pipeline_mode = #tpu.pipeline_mode<synchronous>, transform_indices = @transform_2, window_bounds = array<i64: 16, 256>}, {transform_indices = @transform_3, window_bounds = array<i64: 2, 256, 256>}]} {
    %c0 = arith.constant 0 : index
    %c0_0 = arith.constant 0 : index
    %0 = vector.load %arg2[%c0, %c0_0] : memref<256x16xf32, #tpu.memory_space<vmem>>, vector<256x16xf32>
    %c0_1 = arith.constant 0 : index
    %c0_2 = arith.constant 0 : index
    %1 = vector.load %arg3[%c0_1, %c0_2] : memref<16x256xf32, #tpu.memory_space<vmem>>, vector<16x256xf32>
    %c0_3 = arith.constant 0 : index
    %c0_4 = arith.constant 0 : index
    %c0_5 = arith.constant 0 : index
    %2 = vector.load %arg1[%c0_3, %c0_4, %c0_5] : memref<2x16x16xf32, #tpu.memory_space<vmem>>, vector<2x16x16xf32>
    %3 = vector.shape_cast %2 : vector<2x16x16xf32> to vector<32x16xf32>
    %cst = arith.constant dense<0.000000e+00> : vector<32x256xf32>
    %4 = tpu.matmul %3, %1, %cst {dimension_numbers = #tpu.dot_dimension_numbers<[1], [0], [0], [1], [0, 0, 1, 1], [], []>} : vector<32x16xf32>, vector<16x256xf32>, vector<32x256xf32> -> vector<32x256xf32>
    %5 = vector.extract_strided_slice %4 {offsets = [0, 0], sizes = [16, 256], strides = [1, 1]} : vector<32x256xf32> to vector<16x256xf32>
    %cst_6 = arith.constant dense<0.000000e+00> : vector<256x256xf32>
    %6 = tpu.matmul %0, %5, %cst_6 {dimension_numbers = #tpu.dot_dimension_numbers<[1], [0], [0], [1], [0, 0, 1, 1], [], []>} : vector<256x16xf32>, vector<16x256xf32>, vector<256x256xf32> -> vector<256x256xf32>
    %c0_7 = arith.constant 0 : index
    %c0_8 = arith.constant 0 : index
    %c0_9 = arith.constant 0 : index
    %7 = vector.load %arg4[%c0_7, %c0_8, %c0_9] : memref<2x256x256xf32, #tpu.memory_space<vmem>>, vector<1x256x256xf32>
    %8 = vector.shape_cast %7 : vector<1x256x256xf32> to vector<256x256xf32>
    %9 = vector.shape_cast %6 : vector<256x256xf32> to vector<1x256x256xf32>
    tpu.vector_store %arg4[%c0_7, %c0_8, %c0_9], %9 {strides = array<i32>} : memref<2x256x256xf32, #tpu.memory_space<vmem>>, vector<1x256x256xf32>,
    %10 = vector.extract_strided_slice %4 {offsets = [16, 0], sizes = [16, 256], strides = [1, 1]} : vector<32x256xf32> to vector<16x256xf32>
    %cst_10 = arith.constant dense<0.000000e+00> : vector<256x256xf32>
    %11 = tpu.matmul %0, %10, %cst_10 {dimension_numbers = #tpu.dot_dimension_numbers<[1], [0], [0], [1], [0, 0, 1, 1], [], []>} : vector<256x16xf32>, vector<16x256xf32>, vector<256x256xf32> -> vector<256x256xf32>
    %c1 = arith.constant 1 : index
    %c0_11 = arith.constant 0 : index
    %c0_12 = arith.constant 0 : index
    %12 = vector.load %arg4[%c1, %c0_11, %c0_12] : memref<2x256x256xf32, #tpu.memory_space<vmem>>, vector<1x256x256xf32>
    %13 = vector.shape_cast %12 : vector<1x256x256xf32> to vector<256x256xf32>
    %14 = vector.shape_cast %11 : vector<256x256xf32> to vector<1x256x256xf32>
    tpu.vector_store %arg4[%c1, %c0_11, %c0_12], %14 {strides = array<i32>} : memref<2x256x256xf32, #tpu.memory_space<vmem>>, vector<1x256x256xf32>,
    return
  }
  func.func @transform_0(%arg0: i32) -> (i32, i32, i32) {
    %c0_i32 = arith.constant 0 : i32
    %c0_i32_0 = arith.constant 0 : i32
    %c0_i32_1 = arith.constant 0 : i32
    return %arg0, %c0_i32, %c0_i32_0 : i32, i32, i32
  }
  func.func @transform_1(%arg0: i32) -> (i32, i32) {
    %c0_i32 = arith.constant 0 : i32
    %c0_i32_0 = arith.constant 0 : i32
    %c0_i32_1 = arith.constant 0 : i32
    return %c0_i32, %c0_i32_0 : i32, i32
  }
  func.func @transform_2(%arg0: i32) -> (i32, i32) {
    %c0_i32 = arith.constant 0 : i32
    %c0_i32_0 = arith.constant 0 : i32
    %c0_i32_1 = arith.constant 0 : i32
    return %c0_i32, %c0_i32_0 : i32, i32
  }
  func.func @transform_3(%arg0: i32) -> (i32, i32, i32) {
    %c0_i32 = arith.constant 0 : i32
    %c0_i32_0 = arith.constant 0 : i32
    %c0_i32_1 = arith.constant 0 : i32
    return %arg0, %c0_i32, %c0_i32_0 : i32, i32, i32
  }
}

</mosaic_0001>

<bundles_post_ra>
// kernel: tpu_custom_call.1
= control target key start
LH: loop header
LB: loop body
LE: loop exit
PB: predicated region body
PF: predicated region fallthrough
CT: control target
= control target key end

     0   :  { %8 = vsyncpa [#allocation3], 0  ;;  %s2101_s0 = inlined_call_operand.hbm [shape: f32[8,16,16], index: 0, kind: input, shape index: {}]   ;;  %s2102_s1 = inlined_call_operand.vmem [shape: f32[256,16], index: 1, kind: input, shape index: {}]   ;;  %s2103_s2 = inlined_call_operand.hbm [shape: f32[16,256], index: 2, kind: input, shape index: {}]   ;;  %s2104_s3 = inlined_call_operand.hbm [shape: f32[8,256,256], index: 3, kind: output, shape index: {}]  }
   0x1   :  { %10 = vsyncpa [#allocation3 + $0x1], 0 }
   0x2   :  { %11 = vsyncpa [#allocation6], 0 }
   0x3   :  { %12 = vsyncpa [#allocation4], 0 }
   0x4   :  { %14 = vsyncpa [#allocation4 + $0x1], 0  ;;  %s1562_s12 = smov 0   ;;  %s1564_s13 = smov 0  }
   0x5   :  { %s1566_s14 = smov 0   ;;  %s1568_s15 = smov 0  }
   0x6 LB: > { %s1583_s16 = sadd.s32 4294967295, %s1530_s15   ;;  %s1186_s17 = sadd.s32 4294967294, %s1530_s15   ;;  %s1530_s15 = sphi %s1568_s15, %s2125_s15   ;;  %s1526_s14 = sphi %s1566_s14, %s2124_s14   ;;  %s1522_s13 = sphi %s1564_s13, %s2123_s13   ;;  %s1518_s12 = sphi %s1562_s12, %s2122_s12  }
   0x7   : > { %p40_p0 = scmp.ne.s32.totalorder %s1522_s13, %s1518_s12  ;;  %p2105_p1 = scmp.eq.s32.totalorder %s1583_s16, 0 }
   0x8   : > { %p112_p3 = scmp.eq.s32.totalorder %s1186_s17, 3  ;;  %p1187_p5 = scmp.ge.s32.totalorder %s1530_s15, 1 }
   0x9   : > { %p1592_p4 = por %p2105_p1, %p40_p0  ;;  %p119_p7 = scmp.lt.s32.totalorder %s1530_s15, 5 }
   0xa   : > { %p1597_p6 = por %p112_p3, %p40_p0  ;;  %s1532_s21 = smov [#allocation5]  }
   0xb   : > { %s2109_s18 = scalar_select %p1592_p4, 1, 0 }
   0xc   : > { %s2110_s19 = scalar_select %p1597_p6, 1, 0 }
   0xd   : > { %p1602_p8 = pnand %p1187_p5, %p119_p7  ;;  %s134_s22 = sshll.u32 %s1532_s21, 4  ;;  %s135_s22 = int_to_ptr.vmem [resolvable:$true] %s134_s22 }
   0xe   : > { %s1615_s24 = sadd.s32 1, %s1530_s15   ;;  %s27_s25 = sadd.s32 1, %s1526_s14 }
   0xf   : > { %s2111_s20 = scalar_select %p1602_p8, 1, 0 }
  0x10   : > { %p1352_p9 = pneg %p1602_p8  ;;  %s24_s26 = ssub.s32 %s1530_s15, %s1615_s24 }
  0x11   : > { %s1419_s27 = scalar_lea.vmem %s135_s22, 512  ;;  %p1427_p3 = scmp.lt.s32.totalorder %s135_s22, %s135_s22 }
  0x12   : > { %p1610_p10 = pnand %p1352_p9, %p2105_p1  ;;  %p1420_p12 = scmp.ne.s32.totalorder %s135_s22, %s1419_s27 }
  0x13   : > { %p1428_p5 = scmp.lt.s32.totalorder %s1419_s27, %s1419_s27 }
  0x14   : > { %p1410_p11 = pneg %p1610_p10 }
  0x15   : > { %p1429_p7 = por %p1428_p5, %p1427_p3 }
  0x16   : > { %p1422_p13 = pnand %p1420_p12, %p1410_p11 }
  0x18   : > { %p1423_p0 = pneg %p1422_p13 }
  0x1a   : > { %p1430_p2 = pnand %p1429_p7, %p1423_p0 }
  0x1c   : > { %1433 = shalt.err (!%p1430_p2)
}
  0x1d   : > { %s1533_s28 = smov 256   ;;  %s1534_s29 = smov 16  }
  0x1e   : > { %1355 = dma.hbm_to_vmem [thread:$0]  (!%p1610_p10), %s2103_s2, 512, %s135_s22, [#allocation6], %s1533_s28, %s1533_s28, %s1534_s29  }
  0x1f   : > { %p25_p9 = scmp.eq.s32.totalorder %s24_s26, 0  ;;  %p34_p11 = scmp.ne.s32.totalorder %s1526_s14, %s1522_s13 }
  0x20   : > { %p35_p12 = scmp.eq.s32.totalorder %s1530_s15, 0  ;;  %p1365_p2 = scmp.lt.s32.totalorder %s1530_s15, 4 }
  0x21   : > { %s1632_s5 = scalar_select %p25_p9, %s1526_s14, %s27_s25  }
  0x22   : > { %p36_p13 = por %p35_p12, %p34_p11  ;;  %p2113_p0 = scmp.eq.s32.totalorder %s1583_s16, 3 }
  0x23   : > { %s148_s7 = sand.u32 1, %s1526_s14   ;;  %s1337_s8 = sshll.u32 %s1530_s15, 9 }
  0x24   : > { %p1636_p3 = por %p2113_p0, %p34_p11  ;;  %s1190_s9 = sshll.u32 %s148_s7, 5 }
  0x25   : > { %s1645_s17 = scalar_lea.hbm %s2101_s0, %s1337_s8  ;;  %s152_s21 = scalar_lea.vmem [#allocation2], %s1190_s9 }
  0x26   : > { %s2114_s6 = scalar_select %p1636_p3, 1, 0 }
  0x27   : > { %s160_s22 = sshll.u32 %s152_s21, 4  ;;  %p1647_p10 = pnand %p1365_p2, %p36_p13  ;;  %s1651_s22 = int_to_ptr.vmem [resolvable:$true] %s160_s22 }
  0x28   : > { %s1653_s25 = scalar_lea.sflag [#allocation3], %s148_s7  ;;  %s1434_s26 = scalar_lea.hbm %s1645_s17, 512 }
  0x29   : > { %p1435_p5 = scmp.ne.s32.totalorder %s1645_s17, %s1434_s26  ;;  %p1436_p7 = pneg %p1647_p10 }
  0x2a   : > { %s1439_s29 = scalar_lea.hbm %s2101_s0, 2048  ;;  %p1440_p12 = scmp.lt.s32.totalorder %s1645_s17, %s2101_s0 }
  0x2b   : > { %p1437_p9 = pnand %p1436_p7, %p1435_p5  ;;  %p1441_p2 = scmp.lt.s32.totalorder %s1439_s29, %s1434_s26 }
  0x2d   : > { %p1438_p11 = pneg %p1437_p9  ;;  %p1442_p13 = por %p1441_p2, %p1440_p12 }
  0x2f   : > { %p1443_p0 = pnand %p1442_p13, %p1438_p11 }
  0x31   : > { %1446 = shalt.err (!%p1443_p0)
}
  0x32   : > { %s1447_s7 = scalar_lea.vmem %s1651_s22, 512  ;;  %s1535_s8 = smov [#allocation2]  }
  0x33   : > { %p1448_p1 = scmp.ne.s32.totalorder %s1651_s22, %s1447_s7  ;;  %s1452_s9 = sshll.u32 %s1535_s8, 4  ;;  %s1453_s9 = int_to_ptr.vmem [resolvable:$false] %s1452_s9 }
  0x34   : > { %s1454_s10 = scalar_lea.vmem %s1453_s9, 1024  ;;  %p1455_p9 = scmp.lt.s32.totalorder %s1651_s22, %s1453_s9 }
  0x35   : > { %p1450_p6 = pnand %p1448_p1, %p1436_p7  ;;  %p1456_p3 = scmp.lt.s32.totalorder %s1454_s10, %s1447_s7 }
  0x37   : > { %p1451_p5 = pneg %p1450_p6  ;;  %p1457_p4 = por %p1456_p3, %p1455_p9 }
  0x39   : > { %p1458_p8 = pnand %p1457_p4, %p1451_p5 }
  0x3b   : > { %1461 = shalt.err (!%p1458_p8)
}
  0x3c   : > { %s1536_s11 = smov 128   ;;  %s1537_s21 = smov 8  }
  0x3d   : > { %1359 = dma.hbm_to_vmem [thread:$0]  (!%p1647_p10), %s1645_s17, 512, %s1651_s22, %s1653_s25, %s1536_s11, %s1536_s11, %s1537_s21  }
  0x3e   : > { %p2116_p1 = scmp.ne.s32.totalorder %s2111_s20, 0 }
  0x3f   : > { %s1677_s26 = sand.u32 (!%p2116_p1), 1, %s1522_s13   ;;  %p2117_p4 = scmp.ne.s32.totalorder (!%p2116_p1), %s2109_s18, 0 }
  0x40   : > { %172 = sbr.rel (%p2116_p1) target bundleno = 615 (0x267), region = 32  ;;  %s1195_s27 = sshll.u32 (!%p2116_p1), %s1677_s26, 5 }
  0x41   : > { %s175_s28 = scalar_lea.sflag (!%p2116_p1), [#allocation3], %s1677_s26  ;;  %s178_s29 = scalar_lea.vmem (!%p2116_p1), [#allocation2], %s1195_s27 }
  0x45   : > { %1505 = dma.done.wait (%p2117_p4), %s175_s28, 512  }
  0x46   : > { %1507 = vsyncadd (%p2117_p4), %s175_s28, 4294966784  ;;  %p2118_p6 = scmp.eq.s32.totalorder %s1583_s16, 0 }
  0x48   : > { %1509 = dma.done.wait (%p2118_p6), [#allocation6], 512   ;;  %p2119_p8 = pmov %p2118_p6 }
  0x49   : > { %v1538_v0 = vmov 0.0   ;;  %v242_v1 = vld [vmem:[#allocation5 + $0x18] sm:$0xff]  ;;  %v241_v2 = vld [vmem:[#allocation5 + $0x10] sm:$0xff]  ;;  %v240_v3 = vld [vmem:[#allocation5 + $0x8] sm:$0xff]  ;;  %vm247_vm0 = vcmask 130048   ;;  %s1197_s21 = sshll.u32 %s1677_s26, 10 }
  0x4a   : > { %1511 = vsyncadd (%p2119_p8), [#allocation6], 4294966784  ;;  %324 = vmatprep.mubr.f32.mxu0 %v1538_v0  ;;  %336 = vmatprep.mubr.f32.mxu1 %v1538_v0  ;;  %v239_v4 = vld [vmem:[#allocation5] sm:$0xff]  ;;  %v245_v6 = vld [vmem:[%s178_s29 + $0x10] sm:$0xff]  ;;  %s1922_s27 = scalar_lea.vmem [#allocation7], %s1197_s21  ;;  %s1339_s28 = sshll.u32 %s1583_s16, 14 }
  0x4b   : > { %288 = vmatprep.subr.mxu0 %v242_v1  ;;  %1340 = vmatprep.subr.mxu1 %v242_v1  ;;  %v243_v5 = vld [vmem:[%s178_s29] sm:$0xff]  ;;  %v244_v7 = vld [vmem:[%s178_s29 + $0x8] sm:$0xff]  ;;  %v246_v8 = vld [vmem:[%s178_s29 + $0x18] sm:$0xff]  ;;  %s1103_s29 = sshll.u32 %s1922_s27, 4  ;;  %s2053_s17 = scalar_lea.hbm %s2104_s3, %s1339_s28  ;;  %s2055_s29 = int_to_ptr.vmem [resolvable:$true] %s1103_s29 }
  0x4c   : > { %289 = vmatpush1.msra.mxu0 %v241_v2  ;;  %1342 = vmatpush1.msra.mxu1 %v241_v2  ;;  %v207_v17 = vld [vmem:[%s2102_s1] sm:$0xff]  ;;  %v208_v18 = vld [vmem:[%s2102_s1 + $0x8] sm:$0xff]  ;;  %v209_v19 = vld [vmem:[%s2102_s1 + $0x10] sm:$0xff]  ;;  %s1089_s16 = scalar_lea.sflag [#allocation4], %s1677_s26  ;;  %s1462_s22 = scalar_lea.vmem %s2055_s29, 16384 }
  0x4d   : > { %290 = vmatprep.subr.mxu0 %v240_v3  ;;  %1341 = vmatprep.subr.mxu1 %v240_v3  ;;  %v210_v20 = vld [vmem:[%s2102_s1 + $0x18] sm:$0xff]  ;;  %v211_v21 = vld [vmem:[%s2102_s1 + $0x20] sm:$0xff]  ;;  %v212_v22 = vld [vmem:[%s2102_s1 + $0x28] sm:$0xff]  ;;  %p1463_p3 = scmp.ne.s32.totalorder %s2055_s29, %s1462_s22  ;;  %p2120_p10 = scmp.ne.s32.totalorder %s2114_s6, 0 }
  0x4e   : > { %291 = vmatpush1.msra.mxu0 %v239_v4  ;;  %1343 = vmatpush1.msra.mxu1 %v239_v4  ;;  %v213_v23 = vld [vmem:[%s2102_s1 + $0x30] sm:$0xff]  ;;  %v214_v24 = vld [vmem:[%s2102_s1 + $0x38] sm:$0xff]  ;;  %v215_v25 = vld [vmem:[%s2102_s1 + $0x40] sm:$0xff]  ;;  %s1539_s23 = smov [#allocation7]  }
  0x4f   : > { %1198 = vmatmul.mubr.msk.f32.vlgmr.msra.gmra.mxu0 %vm247_vm0, %v243_v5  ;;  %1200 = vmatmul.mubr.msk.f32.vlgmr.msra.gmra.mxu1 %vm247_vm0, %v245_v6  ;;  %v216_v26 = vld [vmem:[%s2102_s1 + $0x48] sm:$0xff]  ;;  %v217_v27 = vld [vmem:[%s2102_s1 + $0x50] sm:$0xff]  ;;  %v218_v28 = vld [vmem:[%s2102_s1 + $0x58] sm:$0xff]  ;;  %p1464_p7 = pnand %p1463_p3, %p2120_p10  ;;  %s1466_s25 = sshll.u32 %s1539_s23, 4  ;;  %s1467_s25 = int_to_ptr.vmem [resolvable:$false] %s1466_s25 }
  0x50   : > { %330 = vmatprep.mubr.f32.mxu0 %v1538_v0  ;;  %342 = vmatprep.mubr.f32.mxu1 %v1538_v0  ;;  %v219_v29 = vld [vmem:[%s2102_s1 + $0x60] sm:$0xff]  ;;  %v220_v30 = vld [vmem:[%s2102_s1 + $0x68] sm:$0xff]  ;;  %v221_v31 = vld [vmem:[%s2102_s1 + $0x70] sm:$0xff]  ;;  %s1468_s30 = scalar_lea.vmem %s1467_s25, 32768  ;;  %p1469_p12 = scmp.lt.s32.totalorder %s2055_s29, %s1467_s25 }
  0x51   : > { %v222_v32 = vld [vmem:[%s2102_s1 + $0x78] sm:$0xff]  ;;  %v223_v33 = vld [vmem:[%s2102_s1 + $0x80] sm:$0xff]  ;;  %v224_v34 = vld [vmem:[%s2102_s1 + $0x88] sm:$0xff]  ;;  %p1465_p11 = pneg %p1464_p7  ;;  %p1470_p2 = scmp.lt.s32.totalorder %s1468_s30, %s1462_s22 }
  0x52   : > { %v225_v35 = vld [vmem:[%s2102_s1 + $0x90] sm:$0xff]  ;;  %v226_v36 = vld [vmem:[%s2102_s1 + $0x98] sm:$0xff]  ;;  %v227_v37 = vld [vmem:[%s2102_s1 + $0xa0] sm:$0xff] }
  0x53   : > { %1199 = vmatmul.mubr.msk.f32.gmra.mxu0 %vm247_vm0, %v244_v7  ;;  %1201 = vmatmul.mubr.msk.f32.gmra.mxu1 %vm247_vm0, %v246_v8  ;;  %v228_v38 = vld [vmem:[%s2102_s1 + $0xa8] sm:$0xff]  ;;  %v229_v39 = vld [vmem:[%s2102_s1 + $0xb0] sm:$0xff]  ;;  %v230_v40 = vld [vmem:[%s2102_s1 + $0xb8] sm:$0xff]  ;;  %p1471_p13 = por %p1470_p2, %p1469_p12 }
  0x54   : > { %509 = vmatprep.mubr.f32.mxu1 %v1538_v0  ;;  %830 = vmatprep.mubr.f32.mxu0 %v1538_v0  ;;  %v231_v41 = vld [vmem:[%s2102_s1 + $0xc0] sm:$0xff]  ;;  %v232_v42 = vld [vmem:[%s2102_s1 + $0xc8] sm:$0xff]  ;;  %v233_v43 = vld [vmem:[%s2102_s1 + $0xd0] sm:$0xff] }
  0x55   : > { %v234_v44 = vld [vmem:[%s2102_s1 + $0xd8] sm:$0xff]  ;;  %v235_v45 = vld [vmem:[%s2102_s1 + $0xe0] sm:$0xff]  ;;  %v236_v46 = vld [vmem:[%s2102_s1 + $0xe8] sm:$0xff]  ;;  %p1472_p0 = pnand %p1471_p13, %p1465_p11 }
  0x56   : > { %v237_v47 = vld [vmem:[%s2102_s1 + $0xf0] sm:$0xff]  ;;  %v238_v48 = vld [vmem:[%s2102_s1 + $0xf8] sm:$0xff] }
 0x10f   : > { %v326_v9 = vpop.f32.mrf.mxu0  ;;  %v338_v10 = vpop.f32.mrf.mxu1 }
 0x111   : > { %v328_v11 = vpop.f32.mrf.mxu0  ;;  %v340_v12 = vpop.f32.mrf.mxu1 }
 0x113   : > { %v332_v13 = vpop.f32.mrf.mxu0  ;;  %v344_v14 = vpop.f32.mrf.mxu1 }
 0x115   : > { %v334_v15 = vpop.f32.mrf.mxu0  ;;  %v346_v16 = vpop.f32.mrf.mxu1 }
 0x116   : > { %473 = vmatprep.subr.mxu1 %v334_v15  ;;  %794 = vmatprep.subr.mxu0 %v346_v16 }
 0x117   : > { %474 = vmatpush1.msra.mxu1 %v332_v13  ;;  %795 = vmatpush1.msra.mxu0 %v344_v14 }
 0x118   : > { %475 = vmatprep.subr.mxu1 %v328_v11  ;;  %796 = vmatprep.subr.mxu0 %v340_v12 }
 0x119   : > { %476 = vmatpush1.msra.mxu1 %v326_v9  ;;  %797 = vmatpush1.msra.mxu0 %v338_v10 }
 0x11a   : > { %1202 = vmatmul.mubr.msk.f32.vlgmr.msra.gmra.mxu1 %vm247_vm0, %v207_v17  ;;  %1234 = vmatmul.mubr.msk.f32.vlgmr.msra.gmra.mxu0 %vm247_vm0, %v207_v17 }
 0x11b   : > { %515 = vmatprep.mubr.f32.mxu1 %v1538_v0  ;;  %836 = vmatprep.mubr.f32.mxu0 %v1538_v0 }
 0x11e   : > { %1203 = vmatmul.mubr.msk.f32.gmra.mxu1 %vm247_vm0, %v208_v18  ;;  %1235 = vmatmul.mubr.msk.f32.gmra.mxu0 %vm247_vm0, %v208_v18 }
 0x11f   : > { %521 = vmatprep.mubr.f32.mxu1 %v1538_v0  ;;  %842 = vmatprep.mubr.f32.mxu0 %v1538_v0 }
 0x122   : > { %1204 = vmatmul.mubr.msk.f32.gmra.mxu1 %vm247_vm0, %v209_v19  ;;  %1236 = vmatmul.mubr.msk.f32.gmra.mxu0 %vm247_vm0, %v209_v19 }
 0x123   : > { %527 = vmatprep.mubr.f32.mxu1 %v1538_v0  ;;  %848 = vmatprep.mubr.f32.mxu0 %v1538_v0 }
 0x126   : > { %1205 = vmatmul.mubr.msk.f32.gmra.mxu1 %vm247_vm0, %v210_v20  ;;  %1237 = vmatmul.mubr.msk.f32.gmra.mxu0 %vm247_vm0, %v210_v20 }
 0x127   : > { %533 = vmatprep.mubr.f32.mxu1 %v1538_v0  ;;  %854 = vmatprep.mubr.f32.mxu0 %v1538_v0 }
 0x12a   : > { %1206 = vmatmul.mubr.msk.f32.gmra.mxu1 %vm247_vm0, %v211_v21  ;;  %1238 = vmatmul.mubr.msk.f32.gmra.mxu0 %vm247_vm0, %v211_v21 }
 0x12b   : > { %539 = vmatprep.mubr.f32.mxu1 %v1538_v0  ;;  %860 = vmatprep.mubr.f32.mxu0 %v1538_v0 }
 0x12e   : > { %1207 = vmatmul.mubr.msk.f32.gmra.mxu1 %vm247_vm0, %v212_v22  ;;  %1239 = vmatmul.mubr.msk.f32.gmra.mxu0 %vm247_vm0, %v212_v22 }
 0x12f   : > { %545 = vmatprep.mubr.f32.mxu1 %v1538_v0  ;;  %866 = vmatprep.mubr.f32.mxu0 %v1538_v0 }
 0x132   : > { %1208 = vmatmul.mubr.msk.f32.gmra.mxu1 %vm247_vm0, %v213_v23  ;;  %1240 = vmatmul.mubr.msk.f32.gmra.mxu0 %vm247_vm0, %v213_v23 }
 0x133   : > { %551 = vmatprep.mubr.f32.mxu1 %v1538_v0  ;;  %872 = vmatprep.mubr.f32.mxu0 %v1538_v0 }
 0x136   : > { %1209 = vmatmul.mubr.msk.f32.gmra.mxu1 %vm247_vm0, %v214_v24  ;;  %1241 = vmatmul.mubr.msk.f32.gmra.mxu0 %vm247_vm0, %v214_v24 }
 0x137   : > { %557 = vmatprep.mubr.f32.mxu1 %v1538_v0  ;;  %878 = vmatprep.mubr.f32.mxu0 %v1538_v0 }
 0x13a   : > { %1210 = vmatmul.mubr.msk.f32.gmra.mxu1 %vm247_vm0, %v215_v25  ;;  %1242 = vmatmul.mubr.msk.f32.gmra.mxu0 %vm247_vm0, %v215_v25 }
 0x13b   : > { %563 = vmatprep.mubr.f32.mxu1 %v1538_v0  ;;  %884 = vmatprep.mubr.f32.mxu0 %v1538_v0 }
 0x13e   : > { %1211 = vmatmul.mubr.msk.f32.gmra.mxu1 %vm247_vm0, %v216_v26  ;;  %1243 = vmatmul.mubr.msk.f32.gmra.mxu0 %vm247_vm0, %v216_v26 }
 0x13f   : > { %569 = vmatprep.mubr.f32.mxu1 %v1538_v0  ;;  %890 = vmatprep.mubr.f32.mxu0 %v1538_v0 }
 0x142   : > { %1212 = vmatmul.mubr.msk.f32.gmra.mxu1 %vm247_vm0, %v217_v27  ;;  %1244 = vmatmul.mubr.msk.f32.gmra.mxu0 %vm247_vm0, %v217_v27 }
 0x143   : > { %575 = vmatprep.mubr.f32.mxu1 %v1538_v0  ;;  %896 = vmatprep.mubr.f32.mxu0 %v1538_v0 }
 0x146   : > { %1213 = vmatmul.mubr.msk.f32.gmra.mxu1 %vm247_vm0, %v218_v28  ;;  %1245 = vmatmul.mubr.msk.f32.gmra.mxu0 %vm247_vm0, %v218_v28 }
 0x147   : > { %581 = vmatprep.mubr.f32.mxu1 %v1538_v0  ;;  %902 = vmatprep.mubr.f32.mxu0 %v1538_v0 }
 0x14a   : > { %1214 = vmatmul.mubr.msk.f32.gmra.mxu1 %vm247_vm0, %v219_v29  ;;  %1246 = vmatmul.mubr.msk.f32.gmra.mxu0 %vm247_vm0, %v219_v29 }
 0x14b   : > { %587 = vmatprep.mubr.f32.mxu1 %v1538_v0  ;;  %908 = vmatprep.mubr.f32.mxu0 %v1538_v0 }
 0x14e   : > { %1215 = vmatmul.mubr.msk.f32.gmra.mxu1 %vm247_vm0, %v220_v30  ;;  %1247 = vmatmul.mubr.msk.f32.gmra.mxu0 %vm247_vm0, %v220_v30 }
 0x14f   : > { %593 = vmatprep.mubr.f32.mxu1 %v1538_v0  ;;  %914 = vmatprep.mubr.f32.mxu0 %v1538_v0 }
 0x152   : > { %1216 = vmatmul.mubr.msk.f32.gmra.mxu1 %vm247_vm0, %v221_v31  ;;  %1248 = vmatmul.mubr.msk.f32.gmra.mxu0 %vm247_vm0, %v221_v31 }
 0x153   : > { %599 = vmatprep.mubr.f32.mxu1 %v1538_v0  ;;  %920 = vmatprep.mubr.f32.mxu0 %v1538_v0 }
 0x156   : > { %1217 = vmatmul.mubr.msk.f32.gmra.mxu1 %vm247_vm0, %v222_v32  ;;  %1249 = vmatmul.mubr.msk.f32.gmra.mxu0 %vm247_vm0, %v222_v32 }
 0x157   : > { %605 = vmatprep.mubr.f32.mxu1 %v1538_v0  ;;  %926 = vmatprep.mubr.f32.mxu0 %v1538_v0 }
 0x15a   : > { %1218 = vmatmul.mubr.msk.f32.gmra.mxu1 %vm247_vm0, %v223_v33  ;;  %1250 = vmatmul.mubr.msk.f32.gmra.mxu0 %vm247_vm0, %v223_v33 }
 0x15b   : > { %611 = vmatprep.mubr.f32.mxu1 %v1538_v0  ;;  %932 = vmatprep.mubr.f32.mxu0 %v1538_v0 }
 0x15e   : > { %1219 = vmatmul.mubr.msk.f32.gmra.mxu1 %vm247_vm0, %v224_v34  ;;  %1251 = vmatmul.mubr.msk.f32.gmra.mxu0 %vm247_vm0, %v224_v34 }
 0x15f   : > { %617 = vmatprep.mubr.f32.mxu1 %v1538_v0  ;;  %938 = vmatprep.mubr.f32.mxu0 %v1538_v0 }
 0x162   : > { %1220 = vmatmul.mubr.msk.f32.gmra.mxu1 %vm247_vm0, %v225_v35  ;;  %1252 = vmatmul.mubr.msk.f32.gmra.mxu0 %vm247_vm0, %v225_v35 }
 0x163   : > { %623 = vmatprep.mubr.f32.mxu1 %v1538_v0  ;;  %944 = vmatprep.mubr.f32.mxu0 %v1538_v0 }
 0x166   : > { %1221 = vmatmul.mubr.msk.f32.gmra.mxu1 %vm247_vm0, %v226_v36  ;;  %1253 = vmatmul.mubr.msk.f32.gmra.mxu0 %vm247_vm0, %v226_v36 }
 0x167   : > { %629 = vmatprep.mubr.f32.mxu1 %v1538_v0  ;;  %950 = vmatprep.mubr.f32.mxu0 %v1538_v0 }
 0x16a   : > { %1222 = vmatmul.mubr.msk.f32.gmra.mxu1 %vm247_vm0, %v227_v37  ;;  %1254 = vmatmul.mubr.msk.f32.gmra.mxu0 %vm247_vm0, %v227_v37 }
 0x16b   : > { %635 = vmatprep.mubr.f32.mxu1 %v1538_v0  ;;  %956 = vmatprep.mubr.f32.mxu0 %v1538_v0 }
 0x16e   : > { %1223 = vmatmul.mubr.msk.f32.gmra.mxu1 %vm247_vm0, %v228_v38  ;;  %1255 = vmatmul.mubr.msk.f32.gmra.mxu0 %vm247_vm0, %v228_v38 }
 0x16f   : > { %641 = vmatprep.mubr.f32.mxu1 %v1538_v0  ;;  %962 = vmatprep.mubr.f32.mxu0 %v1538_v0 }
 0x172   : > { %1224 = vmatmul.mubr.msk.f32.gmra.mxu1 %vm247_vm0, %v229_v39  ;;  %1256 = vmatmul.mubr.msk.f32.gmra.mxu0 %vm247_vm0, %v229_v39 }
 0x173   : > { %647 = vmatprep.mubr.f32.mxu1 %v1538_v0  ;;  %968 = vmatprep.mubr.f32.mxu0 %v1538_v0 }
 0x176   : > { %1225 = vmatmul.mubr.msk.f32.gmra.mxu1 %vm247_vm0, %v230_v40  ;;  %1257 = vmatmul.mubr.msk.f32.gmra.mxu0 %vm247_vm0, %v230_v40 }
 0x177   : > { %653 = vmatprep.mubr.f32.mxu1 %v1538_v0  ;;  %974 = vmatprep.mubr.f32.mxu0 %v1538_v0 }
 0x17a   : > { %1226 = vmatmul.mubr.msk.f32.gmra.mxu1 %vm247_vm0, %v231_v41  ;;  %1258 = vmatmul.mubr.msk.f32.gmra.mxu0 %vm247_vm0, %v231_v41 }
 0x17b   : > { %659 = vmatprep.mubr.f32.mxu1 %v1538_v0  ;;  %980 = vmatprep.mubr.f32.mxu0 %v1538_v0 }
 0x17e   : > { %1227 = vmatmul.mubr.msk.f32.gmra.mxu1 %vm247_vm0, %v232_v42  ;;  %1259 = vmatmul.mubr.msk.f32.gmra.mxu0 %vm247_vm0, %v232_v42 }
 0x17f   : > { %665 = vmatprep.mubr.f32.mxu1 %v1538_v0  ;;  %986 = vmatprep.mubr.f32.mxu0 %v1538_v0 }
 0x182   : > { %1228 = vmatmul.mubr.msk.f32.gmra.mxu1 %vm247_vm0, %v233_v43  ;;  %1260 = vmatmul.mubr.msk.f32.gmra.mxu0 %vm247_vm0, %v233_v43 }
 0x183   : > { %671 = vmatprep.mubr.f32.mxu1 %v1538_v0  ;;  %992 = vmatprep.mubr.f32.mxu0 %v1538_v0 }
 0x186   : > { %1229 = vmatmul.mubr.msk.f32.gmra.mxu1 %vm247_vm0, %v234_v44  ;;  %1261 = vmatmul.mubr.msk.f32.gmra.mxu0 %vm247_vm0, %v234_v44 }
 0x187   : > { %677 = vmatprep.mubr.f32.mxu1 %v1538_v0  ;;  %998 = vmatprep.mubr.f32.mxu0 %v1538_v0 }
 0x18a   : > { %1230 = vmatmul.mubr.msk.f32.gmra.mxu1 %vm247_vm0, %v235_v45  ;;  %1262 = vmatmul.mubr.msk.f32.gmra.mxu0 %vm247_vm0, %v235_v45 }
 0x18b   : > { %683 = vmatprep.mubr.f32.mxu1 %v1538_v0  ;;  %1004 = vmatprep.mubr.f32.mxu0 %v1538_v0 }
 0x18e   : > { %1231 = vmatmul.mubr.msk.f32.gmra.mxu1 %vm247_vm0, %v236_v46  ;;  %1263 = vmatmul.mubr.msk.f32.gmra.mxu0 %vm247_vm0, %v236_v46 }
 0x18f   : > { %689 = vmatprep.mubr.f32.mxu1 %v1538_v0  ;;  %1010 = vmatprep.mubr.f32.mxu0 %v1538_v0 }
 0x192   : > { %1232 = vmatmul.mubr.msk.f32.gmra.mxu1 %vm247_vm0, %v237_v47  ;;  %1264 = vmatmul.mubr.msk.f32.gmra.mxu0 %vm247_vm0, %v237_v47 }
 0x193   : > { %695 = vmatprep.mubr.f32.mxu1 %v1538_v0  ;;  %1016 = vmatprep.mubr.f32.mxu0 %v1538_v0 }
 0x196   : > { %1233 = vmatmul.mubr.msk.f32.gmra.mxu1 %vm247_vm0, %v238_v48  ;;  %1265 = vmatmul.mubr.msk.f32.gmra.mxu0 %vm247_vm0, %v238_v48 }
 0x1da   : > { %v511_v49 = vpop.f32.mrf.mxu1  ;;  %v832_v50 = vpop.f32.mrf.mxu0 }
 0x1db   : > { %702 = vst [vmem:[%s1922_s27] sm:$0xff] %v511_v49  ;;  %1266 = vst [vmem:[%s1922_s27 + $0x200] sm:$0xff] %v832_v50 }
 0x1dc   : > { %v513_v51 = vpop.f32.mrf.mxu1  ;;  %v834_v52 = vpop.f32.mrf.mxu0 }
 0x1dd   : > { %703 = vst [vmem:[%s1922_s27 + $0x8] sm:$0xff] %v513_v51  ;;  %1267 = vst [vmem:[%s1922_s27 + $0x208] sm:$0xff] %v834_v52 }
 0x1de   : > { %v517_v53 = vpop.f32.mrf.mxu1  ;;  %v838_v54 = vpop.f32.mrf.mxu0 }
 0x1df   : > { %704 = vst [vmem:[%s1922_s27 + $0x10] sm:$0xff] %v517_v53  ;;  %1268 = vst [vmem:[%s1922_s27 + $0x210] sm:$0xff] %v838_v54 }
 0x1e0   : > { %v519_v55 = vpop.f32.mrf.mxu1  ;;  %v840_v56 = vpop.f32.mrf.mxu0 }
 0x1e1   : > { %705 = vst [vmem:[%s1922_s27 + $0x18] sm:$0xff] %v519_v55  ;;  %1269 = vst [vmem:[%s1922_s27 + $0x218] sm:$0xff] %v840_v56 }
 0x1e2   : > { %v523_v57 = vpop.f32.mrf.mxu1  ;;  %v844_v58 = vpop.f32.mrf.mxu0 }
 0x1e3   : > { %706 = vst [vmem:[%s1922_s27 + $0x20] sm:$0xff] %v523_v57  ;;  %1270 = vst [vmem:[%s1922_s27 + $0x220] sm:$0xff] %v844_v58 }
 0x1e4   : > { %v525_v59 = vpop.f32.mrf.mxu1  ;;  %v846_v60 = vpop.f32.mrf.mxu0 }
 0x1e5   : > { %707 = vst [vmem:[%s1922_s27 + $0x28] sm:$0xff] %v525_v59  ;;  %1271 = vst [vmem:[%s1922_s27 + $0x228] sm:$0xff] %v846_v60 }
 0x1e6   : > { %v529_v61 = vpop.f32.mrf.mxu1  ;;  %v850_v62 = vpop.f32.mrf.mxu0 }
 0x1e7   : > { %708 = vst [vmem:[%s1922_s27 + $0x30] sm:$0xff] %v529_v61  ;;  %1272 = vst [vmem:[%s1922_s27 + $0x230] sm:$0xff] %v850_v62 }
 0x1e8   : > { %v531_v63 = vpop.f32.mrf.mxu1  ;;  %v852_v0 = vpop.f32.mrf.mxu0 }
 0x1e9   : > { %709 = vst [vmem:[%s1922_s27 + $0x38] sm:$0xff] %v531_v63  ;;  %1273 = vst [vmem:[%s1922_s27 + $0x238] sm:$0xff] %v852_v0 }
 0x1ea   : > { %v535_v1 = vpop.f32.mrf.mxu1  ;;  %v856_v2 = vpop.f32.mrf.mxu0 }
 0x1eb   : > { %710 = vst [vmem:[%s1922_s27 + $0x40] sm:$0xff] %v535_v1  ;;  %1274 = vst [vmem:[%s1922_s27 + $0x240] sm:$0xff] %v856_v2 }
 0x1ec   : > { %v537_v3 = vpop.f32.mrf.mxu1  ;;  %v858_v4 = vpop.f32.mrf.mxu0 }
 0x1ed   : > { %711 = vst [vmem:[%s1922_s27 + $0x48] sm:$0xff] %v537_v3  ;;  %1275 = vst [vmem:[%s1922_s27 + $0x248] sm:$0xff] %v858_v4 }
 0x1ee   : > { %v541_v5 = vpop.f32.mrf.mxu1  ;;  %v862_v6 = vpop.f32.mrf.mxu0 }
 0x1ef   : > { %712 = vst [vmem:[%s1922_s27 + $0x50] sm:$0xff] %v541_v5  ;;  %1276 = vst [vmem:[%s1922_s27 + $0x250] sm:$0xff] %v862_v6 }
 0x1f0   : > { %v543_v7 = vpop.f32.mrf.mxu1  ;;  %v864_v8 = vpop.f32.mrf.mxu0 }
 0x1f1   : > { %713 = vst [vmem:[%s1922_s27 + $0x58] sm:$0xff] %v543_v7  ;;  %1277 = vst [vmem:[%s1922_s27 + $0x258] sm:$0xff] %v864_v8 }
 0x1f2   : > { %v547_v9 = vpop.f32.mrf.mxu1  ;;  %v868_v10 = vpop.f32.mrf.mxu0 }
 0x1f3   : > { %714 = vst [vmem:[%s1922_s27 + $0x60] sm:$0xff] %v547_v9  ;;  %1278 = vst [vmem:[%s1922_s27 + $0x260] sm:$0xff] %v868_v10 }
 0x1f4   : > { %v549_v11 = vpop.f32.mrf.mxu1  ;;  %v870_v12 = vpop.f32.mrf.mxu0 }
 0x1f5   : > { %715 = vst [vmem:[%s1922_s27 + $0x68] sm:$0xff] %v549_v11  ;;  %1279 = vst [vmem:[%s1922_s27 + $0x268] sm:$0xff] %v870_v12 }
 0x1f6   : > { %v553_v13 = vpop.f32.mrf.mxu1  ;;  %v874_v14 = vpop.f32.mrf.mxu0 }
 0x1f7   : > { %716 = vst [vmem:[%s1922_s27 + $0x70] sm:$0xff] %v553_v13  ;;  %1280 = vst [vmem:[%s1922_s27 + $0x270] sm:$0xff] %v874_v14 }
 0x1f8   : > { %v555_v15 = vpop.f32.mrf.mxu1  ;;  %v876_v16 = vpop.f32.mrf.mxu0 }
 0x1f9   : > { %717 = vst [vmem:[%s1922_s27 + $0x78] sm:$0xff] %v555_v15  ;;  %1281 = vst [vmem:[%s1922_s27 + $0x278] sm:$0xff] %v876_v16 }
 0x1fa   : > { %v559_v17 = vpop.f32.mrf.mxu1  ;;  %v880_v18 = vpop.f32.mrf.mxu0 }
 0x1fb   : > { %718 = vst [vmem:[%s1922_s27 + $0x80] sm:$0xff] %v559_v17  ;;  %1282 = vst [vmem:[%s1922_s27 + $0x280] sm:$0xff] %v880_v18 }
 0x1fc   : > { %v561_v19 = vpop.f32.mrf.mxu1  ;;  %v882_v20 = vpop.f32.mrf.mxu0 }
 0x1fd   : > { %719 = vst [vmem:[%s1922_s27 + $0x88] sm:$0xff] %v561_v19  ;;  %1283 = vst [vmem:[%s1922_s27 + $0x288] sm:$0xff] %v882_v20 }
 0x1fe   : > { %v565_v21 = vpop.f32.mrf.mxu1  ;;  %v886_v22 = vpop.f32.mrf.mxu0 }
 0x1ff   : > { %720 = vst [vmem:[%s1922_s27 + $0x90] sm:$0xff] %v565_v21  ;;  %1284 = vst [vmem:[%s1922_s27 + $0x290] sm:$0xff] %v886_v22 }
 0x200   : > { %v567_v23 = vpop.f32.mrf.mxu1  ;;  %v888_v24 = vpop.f32.mrf.mxu0 }
 0x201   : > { %721 = vst [vmem:[%s1922_s27 + $0x98] sm:$0xff] %v567_v23  ;;  %1285 = vst [vmem:[%s1922_s27 + $0x298] sm:$0xff] %v888_v24 }
 0x202   : > { %v571_v25 = vpop.f32.mrf.mxu1  ;;  %v892_v26 = vpop.f32.mrf.mxu0 }
 0x203   : > { %722 = vst [vmem:[%s1922_s27 + $0xa0] sm:$0xff] %v571_v25  ;;  %1286 = vst [vmem:[%s1922_s27 + $0x2a0] sm:$0xff] %v892_v26 }
 0x204   : > { %v573_v27 = vpop.f32.mrf.mxu1  ;;  %v894_v28 = vpop.f32.mrf.mxu0 }
 0x205   : > { %723 = vst [vmem:[%s1922_s27 + $0xa8] sm:$0xff] %v573_v27  ;;  %1287 = vst [vmem:[%s1922_s27 + $0x2a8] sm:$0xff] %v894_v28 }
 0x206   : > { %v577_v29 = vpop.f32.mrf.mxu1  ;;  %v898_v30 = vpop.f32.mrf.mxu0 }
 0x207   : > { %724 = vst [vmem:[%s1922_s27 + $0xb0] sm:$0xff] %v577_v29  ;;  %1288 = vst [vmem:[%s1922_s27 + $0x2b0] sm:$0xff] %v898_v30 }
 0x208   : > { %v579_v31 = vpop.f32.mrf.mxu1  ;;  %v900_v32 = vpop.f32.mrf.mxu0 }
 0x209   : > { %725 = vst [vmem:[%s1922_s27 + $0xb8] sm:$0xff] %v579_v31  ;;  %1289 = vst [vmem:[%s1922_s27 + $0x2b8] sm:$0xff] %v900_v32 }
 0x20a   : > { %v583_v33 = vpop.f32.mrf.mxu1  ;;  %v904_v34 = vpop.f32.mrf.mxu0 }
 0x20b   : > { %726 = vst [vmem:[%s1922_s27 + $0xc0] sm:$0xff] %v583_v33  ;;  %1290 = vst [vmem:[%s1922_s27 + $0x2c0] sm:$0xff] %v904_v34 }
 0x20c   : > { %v585_v35 = vpop.f32.mrf.mxu1  ;;  %v906_v36 = vpop.f32.mrf.mxu0 }
 0x20d   : > { %727 = vst [vmem:[%s1922_s27 + $0xc8] sm:$0xff] %v585_v35  ;;  %1291 = vst [vmem:[%s1922_s27 + $0x2c8] sm:$0xff] %v906_v36 }
 0x20e   : > { %v589_v37 = vpop.f32.mrf.mxu1  ;;  %v910_v38 = vpop.f32.mrf.mxu0 }
 0x20f   : > { %728 = vst [vmem:[%s1922_s27 + $0xd0] sm:$0xff] %v589_v37  ;;  %1292 = vst [vmem:[%s1922_s27 + $0x2d0] sm:$0xff] %v910_v38 }
 0x210   : > { %v591_v39 = vpop.f32.mrf.mxu1  ;;  %v912_v40 = vpop.f32.mrf.mxu0 }
 0x211   : > { %729 = vst [vmem:[%s1922_s27 + $0xd8] sm:$0xff] %v591_v39  ;;  %1293 = vst [vmem:[%s1922_s27 + $0x2d8] sm:$0xff] %v912_v40 }
 0x212   : > { %v595_v41 = vpop.f32.mrf.mxu1  ;;  %v916_v42 = vpop.f32.mrf.mxu0 }
 0x213   : > { %730 = vst [vmem:[%s1922_s27 + $0xe0] sm:$0xff] %v595_v41  ;;  %1294 = vst [vmem:[%s1922_s27 + $0x2e0] sm:$0xff] %v916_v42 }
 0x214   : > { %v597_v43 = vpop.f32.mrf.mxu1  ;;  %v918_v44 = vpop.f32.mrf.mxu0 }
 0x215   : > { %731 = vst [vmem:[%s1922_s27 + $0xe8] sm:$0xff] %v597_v43  ;;  %1295 = vst [vmem:[%s1922_s27 + $0x2e8] sm:$0xff] %v918_v44 }
 0x216   : > { %v601_v45 = vpop.f32.mrf.mxu1  ;;  %v922_v46 = vpop.f32.mrf.mxu0 }
 0x217   : > { %732 = vst [vmem:[%s1922_s27 + $0xf0] sm:$0xff] %v601_v45  ;;  %1296 = vst [vmem:[%s1922_s27 + $0x2f0] sm:$0xff] %v922_v46 }
 0x218   : > { %v603_v47 = vpop.f32.mrf.mxu1  ;;  %v924_v48 = vpop.f32.mrf.mxu0 }
 0x219   : > { %733 = vst [vmem:[%s1922_s27 + $0xf8] sm:$0xff] %v603_v47  ;;  %1297 = vst [vmem:[%s1922_s27 + $0x2f8] sm:$0xff] %v924_v48 }
 0x21a   : > { %v607_v49 = vpop.f32.mrf.mxu1  ;;  %v928_v50 = vpop.f32.mrf.mxu0 }
 0x21b   : > { %734 = vst [vmem:[%s1922_s27 + $0x100] sm:$0xff] %v607_v49  ;;  %1298 = vst [vmem:[%s1922_s27 + $0x300] sm:$0xff] %v928_v50 }
 0x21c   : > { %v609_v51 = vpop.f32.mrf.mxu1  ;;  %v930_v52 = vpop.f32.mrf.mxu0 }
 0x21d   : > { %735 = vst [vmem:[%s1922_s27 + $0x108] sm:$0xff] %v609_v51  ;;  %1299 = vst [vmem:[%s1922_s27 + $0x308] sm:$0xff] %v930_v52 }
 0x21e   : > { %v613_v53 = vpop.f32.mrf.mxu1  ;;  %v934_v54 = vpop.f32.mrf.mxu0 }
 0x21f   : > { %736 = vst [vmem:[%s1922_s27 + $0x110] sm:$0xff] %v613_v53  ;;  %1300 = vst [vmem:[%s1922_s27 + $0x310] sm:$0xff] %v934_v54 }
 0x220   : > { %v615_v55 = vpop.f32.mrf.mxu1  ;;  %v936_v56 = vpop.f32.mrf.mxu0 }
 0x221   : > { %737 = vst [vmem:[%s1922_s27 + $0x118] sm:$0xff] %v615_v55  ;;  %1301 = vst [vmem:[%s1922_s27 + $0x318] sm:$0xff] %v936_v56 }
 0x222   : > { %v619_v57 = vpop.f32.mrf.mxu1  ;;  %v940_v58 = vpop.f32.mrf.mxu0 }
 0x223   : > { %738 = vst [vmem:[%s1922_s27 + $0x120] sm:$0xff] %v619_v57  ;;  %1302 = vst [vmem:[%s1922_s27 + $0x320] sm:$0xff] %v940_v58 }
 0x224   : > { %v621_v59 = vpop.f32.mrf.mxu1  ;;  %v942_v60 = vpop.f32.mrf.mxu0 }
 0x225   : > { %739 = vst [vmem:[%s1922_s27 + $0x128] sm:$0xff] %v621_v59  ;;  %1303 = vst [vmem:[%s1922_s27 + $0x328] sm:$0xff] %v942_v60 }
 0x226   : > { %v625_v61 = vpop.f32.mrf.mxu1  ;;  %v946_v62 = vpop.f32.mrf.mxu0 }
 0x227   : > { %740 = vst [vmem:[%s1922_s27 + $0x130] sm:$0xff] %v625_v61  ;;  %1304 = vst [vmem:[%s1922_s27 + $0x330] sm:$0xff] %v946_v62 }
 0x228   : > { %v627_v63 = vpop.f32.mrf.mxu1  ;;  %v948_v0 = vpop.f32.mrf.mxu0 }
 0x229   : > { %741 = vst [vmem:[%s1922_s27 + $0x138] sm:$0xff] %v627_v63  ;;  %1305 = vst [vmem:[%s1922_s27 + $0x338] sm:$0xff] %v948_v0 }
 0x22a   : > { %v631_v1 = vpop.f32.mrf.mxu1  ;;  %v952_v2 = vpop.f32.mrf.mxu0 }
 0x22b   : > { %742 = vst [vmem:[%s1922_s27 + $0x140] sm:$0xff] %v631_v1  ;;  %1306 = vst [vmem:[%s1922_s27 + $0x340] sm:$0xff] %v952_v2 }
 0x22c   : > { %v633_v3 = vpop.f32.mrf.mxu1  ;;  %v954_v4 = vpop.f32.mrf.mxu0 }
 0x22d   : > { %743 = vst [vmem:[%s1922_s27 + $0x148] sm:$0xff] %v633_v3  ;;  %1307 = vst [vmem:[%s1922_s27 + $0x348] sm:$0xff] %v954_v4 }
 0x22e   : > { %v637_v5 = vpop.f32.mrf.mxu1  ;;  %v958_v6 = vpop.f32.mrf.mxu0 }
 0x22f   : > { %744 = vst [vmem:[%s1922_s27 + $0x150] sm:$0xff] %v637_v5  ;;  %1308 = vst [vmem:[%s1922_s27 + $0x350] sm:$0xff] %v958_v6 }
 0x230   : > { %v639_v7 = vpop.f32.mrf.mxu1  ;;  %v960_v8 = vpop.f32.mrf.mxu0 }
 0x231   : > { %745 = vst [vmem:[%s1922_s27 + $0x158] sm:$0xff] %v639_v7  ;;  %1309 = vst [vmem:[%s1922_s27 + $0x358] sm:$0xff] %v960_v8 }
 0x232   : > { %v643_v9 = vpop.f32.mrf.mxu1  ;;  %v964_v10 = vpop.f32.mrf.mxu0 }
 0x233   : > { %746 = vst [vmem:[%s1922_s27 + $0x160] sm:$0xff] %v643_v9  ;;  %1310 = vst [vmem:[%s1922_s27 + $0x360] sm:$0xff] %v964_v10 }
 0x234   : > { %v645_v11 = vpop.f32.mrf.mxu1  ;;  %v966_v12 = vpop.f32.mrf.mxu0 }
 0x235   : > { %747 = vst [vmem:[%s1922_s27 + $0x168] sm:$0xff] %v645_v11  ;;  %1311 = vst [vmem:[%s1922_s27 + $0x368] sm:$0xff] %v966_v12 }
 0x236   : > { %v649_v13 = vpop.f32.mrf.mxu1  ;;  %v970_v14 = vpop.f32.mrf.mxu0 }
 0x237   : > { %748 = vst [vmem:[%s1922_s27 + $0x170] sm:$0xff] %v649_v13  ;;  %1312 = vst [vmem:[%s1922_s27 + $0x370] sm:$0xff] %v970_v14 }
 0x238   : > { %v651_v15 = vpop.f32.mrf.mxu1  ;;  %v972_v16 = vpop.f32.mrf.mxu0 }
 0x239   : > { %749 = vst [vmem:[%s1922_s27 + $0x178] sm:$0xff] %v651_v15  ;;  %1313 = vst [vmem:[%s1922_s27 + $0x378] sm:$0xff] %v972_v16 }
 0x23a   : > { %v655_v17 = vpop.f32.mrf.mxu1  ;;  %v976_v18 = vpop.f32.mrf.mxu0 }
 0x23b   : > { %750 = vst [vmem:[%s1922_s27 + $0x180] sm:$0xff] %v655_v17  ;;  %1314 = vst [vmem:[%s1922_s27 + $0x380] sm:$0xff] %v976_v18 }
 0x23c   : > { %v657_v19 = vpop.f32.mrf.mxu1  ;;  %v978_v20 = vpop.f32.mrf.mxu0 }
 0x23d   : > { %751 = vst [vmem:[%s1922_s27 + $0x188] sm:$0xff] %v657_v19  ;;  %1315 = vst [vmem:[%s1922_s27 + $0x388] sm:$0xff] %v978_v20 }
 0x23e   : > { %v661_v21 = vpop.f32.mrf.mxu1  ;;  %v982_v22 = vpop.f32.mrf.mxu0 }
 0x23f   : > { %752 = vst [vmem:[%s1922_s27 + $0x190] sm:$0xff] %v661_v21  ;;  %1316 = vst [vmem:[%s1922_s27 + $0x390] sm:$0xff] %v982_v22 }
 0x240   : > { %v663_v23 = vpop.f32.mrf.mxu1  ;;  %v984_v24 = vpop.f32.mrf.mxu0 }
 0x241   : > { %753 = vst [vmem:[%s1922_s27 + $0x198] sm:$0xff] %v663_v23  ;;  %1317 = vst [vmem:[%s1922_s27 + $0x398] sm:$0xff] %v984_v24 }
 0x242   : > { %v667_v25 = vpop.f32.mrf.mxu1  ;;  %v988_v26 = vpop.f32.mrf.mxu0 }
 0x243   : > { %754 = vst [vmem:[%s1922_s27 + $0x1a0] sm:$0xff] %v667_v25  ;;  %1318 = vst [vmem:[%s1922_s27 + $0x3a0] sm:$0xff] %v988_v26 }
 0x244   : > { %v669_v27 = vpop.f32.mrf.mxu1  ;;  %v990_v28 = vpop.f32.mrf.mxu0 }
 0x245   : > { %755 = vst [vmem:[%s1922_s27 + $0x1a8] sm:$0xff] %v669_v27  ;;  %1319 = vst [vmem:[%s1922_s27 + $0x3a8] sm:$0xff] %v990_v28 }
 0x246   : > { %v673_v29 = vpop.f32.mrf.mxu1  ;;  %v994_v30 = vpop.f32.mrf.mxu0 }
 0x247   : > { %756 = vst [vmem:[%s1922_s27 + $0x1b0] sm:$0xff] %v673_v29  ;;  %1320 = vst [vmem:[%s1922_s27 + $0x3b0] sm:$0xff] %v994_v30 }
 0x248   : > { %v675_v31 = vpop.f32.mrf.mxu1  ;;  %v996_v32 = vpop.f32.mrf.mxu0 }
 0x249   : > { %757 = vst [vmem:[%s1922_s27 + $0x1b8] sm:$0xff] %v675_v31  ;;  %1321 = vst [vmem:[%s1922_s27 + $0x3b8] sm:$0xff] %v996_v32 }
 0x24a   : > { %v679_v33 = vpop.f32.mrf.mxu1  ;;  %v1000_v34 = vpop.f32.mrf.mxu0 }
 0x24b   : > { %758 = vst [vmem:[%s1922_s27 + $0x1c0] sm:$0xff] %v679_v33  ;;  %1322 = vst [vmem:[%s1922_s27 + $0x3c0] sm:$0xff] %v1000_v34 }
 0x24c   : > { %v681_v35 = vpop.f32.mrf.mxu1  ;;  %v1002_v36 = vpop.f32.mrf.mxu0 }
 0x24d   : > { %759 = vst [vmem:[%s1922_s27 + $0x1c8] sm:$0xff] %v681_v35  ;;  %1323 = vst [vmem:[%s1922_s27 + $0x3c8] sm:$0xff] %v1002_v36 }
 0x24e   : > { %v685_v37 = vpop.f32.mrf.mxu1  ;;  %v1006_v38 = vpop.f32.mrf.mxu0 }
 0x24f   : > { %760 = vst [vmem:[%s1922_s27 + $0x1d0] sm:$0xff] %v685_v37  ;;  %1324 = vst [vmem:[%s1922_s27 + $0x3d0] sm:$0xff] %v1006_v38 }
 0x250   : > { %v687_v39 = vpop.f32.mrf.mxu1  ;;  %v1008_v40 = vpop.f32.mrf.mxu0 }
 0x251   : > { %761 = vst [vmem:[%s1922_s27 + $0x1d8] sm:$0xff] %v687_v39  ;;  %1325 = vst [vmem:[%s1922_s27 + $0x3d8] sm:$0xff] %v1008_v40 }
 0x252   : > { %v691_v41 = vpop.f32.mrf.mxu1  ;;  %v1012_v42 = vpop.f32.mrf.mxu0 }
 0x253   : > { %762 = vst [vmem:[%s1922_s27 + $0x1e0] sm:$0xff] %v691_v41  ;;  %1326 = vst [vmem:[%s1922_s27 + $0x3e0] sm:$0xff] %v1012_v42 }
 0x254   : > { %v693_v43 = vpop.f32.mrf.mxu1  ;;  %v1014_v44 = vpop.f32.mrf.mxu0 }
 0x255   : > { %763 = vst [vmem:[%s1922_s27 + $0x1e8] sm:$0xff] %v693_v43  ;;  %1327 = vst [vmem:[%s1922_s27 + $0x3e8] sm:$0xff] %v1014_v44 }
 0x256   : > { %v697_v45 = vpop.f32.mrf.mxu1  ;;  %v1018_v46 = vpop.f32.mrf.mxu0 }
 0x257   : > { %764 = vst [vmem:[%s1922_s27 + $0x1f0] sm:$0xff] %v697_v45  ;;  %1328 = vst [vmem:[%s1922_s27 + $0x3f0] sm:$0xff] %v1018_v46 }
 0x258   : > { %v699_v47 = vpop.f32.mrf.mxu1  ;;  %v1020_v48 = vpop.f32.mrf.mxu0 }
 0x259   : > { %765 = vst [vmem:[%s1922_s27 + $0x1f8] sm:$0xff] %v699_v47  ;;  %1329 = vst [vmem:[%s1922_s27 + $0x3f8] sm:$0xff] %v1020_v48 }
 0x25a   : > { %1475 = shalt.err (!%p1472_p0)
}
 0x25b   : > { %s1476_s4 = scalar_lea.hbm %s2053_s17, 16384  ;;  %s1480_s9 = scalar_lea.hbm %s2104_s3, 65536 }
 0x25c   : > { %p1477_p5 = scmp.ne.s32.totalorder %s2053_s17, %s1476_s4  ;;  %p1481_p4 = scmp.lt.s32.totalorder %s2053_s17, %s2104_s3 }
 0x25d   : > { %p1482_p6 = scmp.lt.s32.totalorder %s1480_s9, %s1476_s4 }
 0x25e   : > { %p1478_p9 = pnand %p1477_p5, %p2120_p10 }
 0x25f   : > { %p1483_p8 = por %p1482_p6, %p1481_p4 }
 0x260   : > { %p1479_p1 = pneg %p1478_p9 }
 0x262   : > { %p1484_p3 = pnand %p1483_p8, %p1479_p1 }
 0x264   : > { %1487 = shalt.err (!%p1484_p3)
}
 0x265   : > { %s1540_s21 = smov 256   ;;  %s1541_s27 = smov 16  }
 0x266   : > { %1350 = dma.vmem_to_hbm [thread:$0]  (%p2120_p10), %s2055_s29, 16384, %s2053_s17, %s1089_s16, %s1540_s21, %s1540_s21, %s1541_s27  }
 0x267 PF: > { %p1367_p7 = scmp.ge.s32.totalorder %s1530_s15, 2  ;;  %s1118_s28 = sand.u32 1, %s1518_s12  }
 0x268   : > { %p2121_p11 = scmp.ne.s32.totalorder %s2110_s19, 0  ;;  %s1119_s18 = scalar_lea.sflag [#allocation4], %s1118_s28 }
 0x26a   : > { %p1361_p12 = pnand %p1367_p7, %p2121_p11 }
 0x26c   : > { %p1362_p2 = pneg %p1361_p12 }
 0x26e   : > { %1513 = dma.done.wait (%p1362_p2), %s1119_s18, 16384  }
 0x26f   : > { %1515 = vsyncadd (%p1362_p2), %s1119_s18, 4294950912  ;;  %p17_p13 = scmp.ge.s32.totalorder %s1615_s24, 6   ;;  %s2122_s12 = smov %s1522_s13 }
 0x270   : > { %s2123_s13 = smov %s1526_s14  ;;  %s2124_s14 = smov %s1632_s5 }
 0x271   : > { %s2125_s15 = smov %s1615_s24  ;;  %19 = sbr.rel (!%p17_p13) target bundleno = 6 (0x6), region = 82 }
 0x276   :  { %1124 = vsyncpa [#allocation3], 1 }
 0x277   :  { %1126 = vsyncpa [#allocation3 + $0x1], 1 }
 0x278   :  { %1127 = vsyncpa [#allocation6], 1 }
 0x279   :  { %1128 = vsyncpa [#allocation4], 1 }
 0x27a   :  { %1130 = vsyncpa [#allocation4 + $0x1], 1 }

</bundles_post_ra>
